<compile_context>
chip_gen: v5e
topology: v5e:2x2
jax: 0.10.0
libtpu: 0.0.40
codegen_flags: <defaults>
</compile_context>

<pallas_src>
import functools

import jax
import jax.numpy as jnp
from jax.experimental import pallas as pl
from jax.experimental.pallas import tpu as pltpu

LANES = 128
MAX_BLOCK_ROWS = 1024   # (1024,128) f32 = 512 KiB per input block; 2 inputs x 2 bufs = 2 MiB
NUM_SPLITS = 2          # megacore split (v7x: 2 TCs); extra split is harmless on 1-TC chips


def _dice_partial_kernel(x_ref, y_ref, inter_ref, union_ref, *,
                         rows, block_rows, bps, need_mask):
    """Accumulate lane-wise partial sums for one row-block into the per-split
    (1, 128) output accumulators (resident in VMEM across the inner grid axis)."""
    j = pl.program_id(1)

    @pl.when(j == 0)
    def _():
        inter_ref[...] = jnp.zeros_like(inter_ref)
        union_ref[...] = jnp.zeros_like(union_ref)

    x = x_ref[...].astype(jnp.float32)
    y = y_ref[...].astype(jnp.float32)

    if need_mask:
        # Mask rows past the true row count. Uses the LOGICAL block id, so
        # blocks whose DMA index was clamped (fully out-of-range splits) and the
        # garbage tail of the partial last block both contribute exactly zero.
        lb = pl.program_id(0) * bps + j
        row_start = lb * block_rows
        rid = jax.lax.broadcasted_iota(jnp.int32, (block_rows, LANES), 0)
        valid = (rid + row_start) < rows
        x = jnp.where(valid, x, 0.0)
        y = jnp.where(valid, y, 0.0)

    # Two reductions instead of three: sum(x) + sum(y) == sum(x + y).
    # axis-0 reduce = mostly elementwise vreg adds (VPU), hidden under the DMA.
    inter_ref[...] += jnp.sum(x * y, axis=0, keepdims=True)
    union_ref[...] += jnp.sum(x + y, axis=0, keepdims=True)


def dice_loss(inputs, targets, smooth: float = 1.0, reduction: str = "mean",
              block_rows: int | None = None):
    """Pallas DiceLoss forward. `reduction` kept for API parity (scalar output
    makes 'mean'/'sum' identical). `block_rows` must be a multiple of 8 (or be
    clipped to the full row count, which the default path guarantees)."""
    del reduction
    smooth = float(smooth)

    x = inputs.reshape(-1)
    y = targets.reshape(-1)
    n = x.shape[0]
    if n == 0:
        # (0 + smooth) / (0 + smooth) = 1  ->  loss = 0
        return jnp.float32(0.0)

    # Lane-align to (rows, 128). Pad only when n is not a multiple of 128
    # (zero padding contributes 0 to both sums); typical segmentation shapes
    # skip this entirely and the reshape is a free bitcast.
    rem = (-n) % LANES
    if rem:
        x = jnp.pad(x, (0, rem))
        y = jnp.pad(y, (0, rem))
    rows = (n + rem) // LANES
    x = x.reshape(rows, LANES)
    y = y.reshape(rows, LANES)

    if block_rows is None:
        block_rows = MAX_BLOCK_ROWS
    block_rows = min(block_rows, rows)

    total_blocks = pl.cdiv(rows, block_rows)
    num_splits = min(NUM_SPLITS, total_blocks)
    bps = pl.cdiv(total_blocks, num_splits)          # row-blocks per split
    need_mask = (num_splits * bps * block_rows) != rows

    def in_map(s, j):
        # Clamp so the pipeline never issues a fully out-of-bounds DMA; the
        # in-kernel mask (driven by the logical block id) zeroes any duplicate
        # or partially-valid block data.
        return (jnp.minimum(s * bps + j, total_blocks - 1), 0)

    kernel = functools.partial(
        _dice_partial_kernel,
        rows=rows, block_rows=block_rows, bps=bps, need_mask=need_mask)

    part_shape = jax.ShapeDtypeStruct((num_splits, 1, LANES), jnp.float32)
    part_spec = pl.BlockSpec((None, 1, LANES), lambda s, j: (s, 0, 0))

    inter_p, union_p = pl.pallas_call(
        kernel,
        out_shape=(part_shape, part_shape),
        grid_spec=pltpu.PrefetchScalarGridSpec(
            num_scalar_prefetch=0,
            grid=(num_splits, bps),
            in_specs=[
                pl.BlockSpec((block_rows, LANES), in_map),
                pl.BlockSpec((block_rows, LANES), in_map),
            ],
            out_specs=[part_spec, part_spec],
        ),
        compiler_params=pltpu.CompilerParams(
            dimension_semantics=("parallel", "arbitrary")),
    )(x, y)

    # Final tiny cross-lane reduce + dice arithmetic (negligible work).
    intersection = jnp.sum(inter_p)
    union = jnp.sum(union_p)
    dice = (2.0 * intersection + smooth) / (union + smooth)
    return (1.0 - dice).astype(jnp.float32)


def _reference(inputs, targets, smooth=1.0):
    xi = inputs.reshape(-1).astype(jnp.float32)
    yi = targets.reshape(-1).astype(jnp.float32)
    inter = jnp.sum(xi * yi)
    union = jnp.sum(xi) + jnp.sum(yi)
    return 1.0 - (2.0 * inter + smooth) / (union + smooth)


if __name__ == "__main__":
    key = jax.random.PRNGKey(0)
    k_in, k_tgt, k_in2, k_tgt2 = jax.random.split(key, 4)

    # Test 1: segmentation-style NCHW = (2, 4, 16, 16); n = 2048 (lane-aligned path).
    logits = jax.random.normal(k_in, (2, 4, 16, 16), dtype=jnp.float32)
    inputs = jax.nn.sigmoid(logits)
    targets = (jax.random.uniform(k_tgt, (2, 4, 16, 16)) > 0.5).astype(jnp.float32)

    loss = jax.block_until_ready(dice_loss(inputs, targets, smooth=1.0))
    ref = _reference(inputs, targets, smooth=1.0)
    assert jnp.allclose(loss, ref, rtol=1e-4, atol=1e-6), (loss, ref)

    # Test 2: ragged size (1, 1, 50, 50) with a tiny block_rows so the
    # pad / partial-block mask / split-clamp paths are all exercised.
    logits2 = jax.random.normal(k_in2, (1, 1, 50, 50), dtype=jnp.float32)
    inputs2 = jax.nn.sigmoid(logits2)
    targets2 = (jax.random.uniform(k_tgt2, (1, 1, 50, 50)) > 0.5).astype(jnp.float32)

    loss2 = jax.block_until_ready(dice_loss(inputs2, targets2, smooth=1.0, block_rows=8))
    ref2 = _reference(inputs2, targets2, smooth=1.0)
    assert jnp.allclose(loss2, ref2, rtol=1e-4, atol=1e-6), (loss2, ref2)

    print("KERNEL_OK")
</pallas_src>

<mosaic_0001>
module attributes {stable_mosaic.version = 11 : i64} {
  func.func @_dice_partial_kernel(%arg0: i32, %arg1: i32, %arg2: memref<16x128xf32, #tpu.memory_space<vmem>>, %arg3: memref<16x128xf32, #tpu.memory_space<vmem>>, %arg4: memref<1x1x128xf32, #tpu.memory_space<vmem>>, %arg5: memref<1x1x128xf32, #tpu.memory_space<vmem>>) attributes {dimension_semantics = [#tpu.dimension_semantics<parallel>, #tpu.dimension_semantics<arbitrary>], iteration_bounds = array<i64: 1, 1>, scalar_prefetch = 0 : i64, scratch_operands = 0 : i64, tpu.core_type = #tpu.core_type<tc>, window_params = [{transform_indices = @transform_0, window_bounds = array<i64: 16, 128>}, {transform_indices = @transform_1, window_bounds = array<i64: 16, 128>}, {transform_indices = @transform_2, window_bounds = array<i64: 1, 1, 128>}, {transform_indices = @transform_3, window_bounds = array<i64: 1, 1, 128>}]} {
    %c0_i32 = arith.constant 0 : i32
    %0 = arith.cmpi eq, %arg1, %c0_i32 : i32
    %1 = arith.extui %0 : i1 to i32
    %c0_i32_0 = arith.constant 0 : i32
    %2 = arith.cmpi ne, %1, %c0_i32_0 : i32
    scf.if %2 {
      %cst_17 = arith.constant 0.000000e+00 : f32
      %23 = vector.broadcast %cst_17 : f32 to vector<1x128xf32>
      %c0_18 = arith.constant 0 : index
      %c0_19 = arith.constant 0 : index
      %c0_20 = arith.constant 0 : index
      %24 = vector.load %arg4[%c0_18, %c0_19, %c0_20] : memref<1x1x128xf32, #tpu.memory_space<vmem>>, vector<1x1x128xf32>
      %25 = vector.shape_cast %24 : vector<1x1x128xf32> to vector<1x128xf32>
      %26 = vector.shape_cast %23 : vector<1x128xf32> to vector<1x1x128xf32>
      tpu.vector_store %arg4[%c0_18, %c0_19, %c0_20], %26 {strides = array<i32>} : memref<1x1x128xf32, #tpu.memory_space<vmem>>, vector<1x1x128xf32>,
      %cst_21 = arith.constant 0.000000e+00 : f32
      %27 = vector.broadcast %cst_21 : f32 to vector<1x128xf32>
      %c0_22 = arith.constant 0 : index
      %c0_23 = arith.constant 0 : index
      %c0_24 = arith.constant 0 : index
      %28 = vector.load %arg5[%c0_22, %c0_23, %c0_24] : memref<1x1x128xf32, #tpu.memory_space<vmem>>, vector<1x1x128xf32>
      %29 = vector.shape_cast %28 : vector<1x1x128xf32> to vector<1x128xf32>
      %30 = vector.shape_cast %27 : vector<1x128xf32> to vector<1x1x128xf32>
      tpu.vector_store %arg5[%c0_22, %c0_23, %c0_24], %30 {strides = array<i32>} : memref<1x1x128xf32, #tpu.memory_space<vmem>>, vector<1x1x128xf32>,
    } else {
    }
    %c0 = arith.constant 0 : index
    %c0_1 = arith.constant 0 : index
    %3 = vector.load %arg2[%c0, %c0_1] : memref<16x128xf32, #tpu.memory_space<vmem>>, vector<16x128xf32>
    %c0_2 = arith.constant 0 : index
    %c0_3 = arith.constant 0 : index
    %4 = vector.load %arg3[%c0_2, %c0_3] : memref<16x128xf32, #tpu.memory_space<vmem>>, vector<16x128xf32>
    %c0_4 = arith.constant 0 : index
    %c0_5 = arith.constant 0 : index
    %c0_6 = arith.constant 0 : index
    %5 = vector.load %arg4[%c0_4, %c0_5, %c0_6] : memref<1x1x128xf32, #tpu.memory_space<vmem>>, vector<1x1x128xf32>
    %6 = vector.shape_cast %5 : vector<1x1x128xf32> to vector<1x128xf32>
    %7 = arith.mulf %3, %4 : vector<16x128xf32>
    %cst = arith.constant dense<0.000000e+00> : vector<128xf32>
    %8 = vector.multi_reduction <add>, %7, %cst [0] : vector<16x128xf32> to vector<128xf32>
    %9 = vector.shape_cast %8 : vector<128xf32> to vector<1x128xf32>
    %10 = arith.addf %6, %9 : vector<1x128xf32>
    %c0_7 = arith.constant 0 : index
    %c0_8 = arith.constant 0 : index
    %c0_9 = arith.constant 0 : index
    %11 = vector.load %arg4[%c0_7, %c0_8, %c0_9] : memref<1x1x128xf32, #tpu.memory_space<vmem>>, vector<1x1x128xf32>
    %12 = vector.shape_cast %11 : vector<1x1x128xf32> to vector<1x128xf32>
    %13 = vector.shape_cast %10 : vector<1x128xf32> to vector<1x1x128xf32>
    tpu.vector_store %arg4[%c0_7, %c0_8, %c0_9], %13 {strides = array<i32>} : memref<1x1x128xf32, #tpu.memory_space<vmem>>, vector<1x1x128xf32>,
    %c0_10 = arith.constant 0 : index
    %c0_11 = arith.constant 0 : index
    %c0_12 = arith.constant 0 : index
    %14 = vector.load %arg5[%c0_10, %c0_11, %c0_12] : memref<1x1x128xf32, #tpu.memory_space<vmem>>, vector<1x1x128xf32>
    %15 = vector.shape_cast %14 : vector<1x1x128xf32> to vector<1x128xf32>
    %16 = arith.addf %3, %4 : vector<16x128xf32>
    %cst_13 = arith.constant dense<0.000000e+00> : vector<128xf32>
    %17 = vector.multi_reduction <add>, %16, %cst_13 [0] : vector<16x128xf32> to vector<128xf32>
    %18 = vector.shape_cast %17 : vector<128xf32> to vector<1x128xf32>
    %19 = arith.addf %15, %18 : vector<1x128xf32>
    %c0_14 = arith.constant 0 : index
    %c0_15 = arith.constant 0 : index
    %c0_16 = arith.constant 0 : index
    %20 = vector.load %arg5[%c0_14, %c0_15, %c0_16] : memref<1x1x128xf32, #tpu.memory_space<vmem>>, vector<1x1x128xf32>
    %21 = vector.shape_cast %20 : vector<1x1x128xf32> to vector<1x128xf32>
    %22 = vector.shape_cast %19 : vector<1x128xf32> to vector<1x1x128xf32>
    tpu.vector_store %arg5[%c0_14, %c0_15, %c0_16], %22 {strides = array<i32>} : memref<1x1x128xf32, #tpu.memory_space<vmem>>, vector<1x1x128xf32>,
    return
  }
  func.func @transform_0(%arg0: i32, %arg1: i32) -> (i32, i32) {
    %c1_i32 = arith.constant 1 : i32
    %0 = arith.muli %arg0, %c1_i32 : i32
    %1 = arith.addi %0, %arg1 : i32
    %c0_i32 = arith.constant 0 : i32
    %2 = arith.minsi %1, %c0_i32 : i32
    %c0_i32_0 = arith.constant 0 : i32
    %c0_i32_1 = arith.constant 0 : i32
    return %2, %c0_i32_0 : i32, i32
  }
  func.func @transform_1(%arg0: i32, %arg1: i32) -> (i32, i32) {
    %c1_i32 = arith.constant 1 : i32
    %0 = arith.muli %arg0, %c1_i32 : i32
    %1 = arith.addi %0, %arg1 : i32
    %c0_i32 = arith.constant 0 : i32
    %2 = arith.minsi %1, %c0_i32 : i32
    %c0_i32_0 = arith.constant 0 : i32
    %c0_i32_1 = arith.constant 0 : i32
    return %2, %c0_i32_0 : i32, i32
  }
  func.func @transform_2(%arg0: i32, %arg1: i32) -> (i32, i32, i32) {
    %c0_i32 = arith.constant 0 : i32
    %c0_i32_0 = arith.constant 0 : i32
    %c0_i32_1 = arith.constant 0 : i32
    return %arg0, %c0_i32, %c0_i32_0 : i32, i32, i32
  }
  func.func @transform_3(%arg0: i32, %arg1: i32) -> (i32, i32, i32) {
    %c0_i32 = arith.constant 0 : i32
    %c0_i32_0 = arith.constant 0 : i32
    %c0_i32_1 = arith.constant 0 : i32
    return %arg0, %c0_i32, %c0_i32_0 : i32, i32, i32
  }
}

</mosaic_0001>

<bundles_post_ra>
// kernel: tpu_custom_call.1
= control target key start
LH: loop header
LB: loop body
LE: loop exit
PB: predicated region body
PF: predicated region fallthrough
CT: control target
= control target key end

     0   :  { %9 = vsyncpa [#allocation3], 0  ;;  %s289_s0 = inlined_call_operand.hbm [shape: f32[16,128], index: 0, kind: input, shape index: {}]   ;;  %s290_s1 = inlined_call_operand.hbm [shape: f32[16,128], index: 1, kind: input, shape index: {}]   ;;  %s291_s2 = inlined_call_operand.hbm [shape: f32[1,1,128], index: 2, kind: output, shape index: {0}]   ;;  %s292_s3 = inlined_call_operand.hbm [shape: f32[1,1,128], index: 3, kind: output, shape index: {1}]  }
   0x1   :  { %10 = vsyncpa [#allocation6], 0 }
   0x2   :  { %11 = vsyncpa [#allocation4], 0 }
   0x3   :  { %12 = vsyncpa [#allocation9], 0  ;;  %s23_s14 = sshll.u32 %s289_s0, 4  ;;  %s250_s15 = smov [#allocation2]   ;;  %s24_s14 = int_to_ptr.hbm [resolvable:$true] %s23_s14 }
   0x4   :  { %s25_s16 = sshll.u32 %s250_s15, 4  ;;  %s42_s19 = sshll.u32 %s290_s1, 4  ;;  %s26_s16 = int_to_ptr.vmem [resolvable:$true] %s25_s16  ;;  %s43_s19 = int_to_ptr.hbm [resolvable:$true] %s42_s19 }
   0x5   :  { %s251_s20 = smov 128   ;;  %s252_s21 = smov 8  }
   0x6   :  { %31 = dma.hbm_to_vmem [thread:$0]  %s24_s14, 256, %s26_s16, [#allocation3], %s251_s20, %s251_s20, %s252_s21  }
   0x7   :  { %s253_s22 = smov [#allocation5]  }
   0x8   :  { %s44_s23 = sshll.u32 %s253_s22, 4  ;;  %s45_s23 = int_to_ptr.vmem [resolvable:$true] %s44_s23 }
   0x9   :  { %50 = dma.hbm_to_vmem [thread:$0]  %s43_s19, 256, %s45_s23, [#allocation6], %s251_s20, %s251_s20, %s252_s21  }
   0xa   :  { %242 = dma.done.wait [#allocation3], 256  }
   0xb   :  { %243 = vsyncadd [#allocation3], 4294967040 }
   0xc   :  { %244 = dma.done.wait [#allocation6], 256  }
   0xd   :  { %245 = vsyncadd [#allocation6], 4294967040  ;;  %v254_v0 = vmov 0.0   ;;  %v73_v1 = vld [vmem:[#allocation2] sm:$0xff]  ;;  %v74_v2 = vld [vmem:[#allocation2 + $0x8] sm:$0xff]  ;;  %s255_s0 = smov [#allocation7]  }
   0xe   :  { %71 = vst [vmem:[#allocation7] sm:$0x1] %v254_v0  ;;  %v75_v3 = vld [vmem:[#allocation5] sm:$0xff]  ;;  %v76_v4 = vld [vmem:[#allocation5 + $0x8] sm:$0xff]  ;;  %s106_s1 = sshll.u32 %s255_s0, 4  ;;  %s108_s26 = sshll.u32 %s291_s2, 4  ;;  %s107_s1 = int_to_ptr.vmem [resolvable:$true] %s106_s1  ;;  %s109_s26 = int_to_ptr.hbm [resolvable:$true] %s108_s26 }
   0xf   :  { %72 = vst [vmem:[#allocation8] sm:$0x1] %v254_v0  ;;  %v78_v5 = vmul.f32 %v75_v3, %v73_v1  ;;  %v90_v6 = vadd.f32 %v75_v3, %v73_v1  ;;  %v79_v7 = vmul.f32 %v76_v4, %v74_v2  ;;  %v91_v8 = vadd.f32 %v76_v4, %v74_v2  ;;  %s256_s27 = smov [#allocation8]   ;;  %s119_s4 = sshll.u32 %s292_s3, 4  ;;  %s120_s4 = int_to_ptr.hbm [resolvable:$true] %s119_s4 }
  0x10   :  { %s117_s28 = sshll.u32 %s256_s27, 4  ;;  %s118_s28 = int_to_ptr.vmem [resolvable:$true] %s117_s28 }
  0x11   :  { %v80_v9 = vadd.f32 %v79_v7, %v78_v5  ;;  %v92_v10 = vadd.f32 %v91_v8, %v90_v6 }
  0x13   :  { %v81_v11 = vrot.slane %v80_v9, 4  ;;  %v93_v12 = vrot.slane %v92_v10, 4 }
  0x15   :  { %v82_v13 = vadd.f32 %v81_v11, %v80_v9  ;;  %v94_v14 = vadd.f32 %v93_v12, %v92_v10  ;;  %v77_v21 = vld [vmem:[#allocation7] sm:$0x1] }
  0x16   :  { %v89_v22 = vld [vmem:[#allocation8] sm:$0x1] }
  0x17   :  { %v83_v15 = vrot.slane %v82_v13, 2  ;;  %v95_v16 = vrot.slane %v94_v14, 2 }
  0x19   :  { %v84_v17 = vadd.f32 %v83_v15, %v82_v13  ;;  %v96_v18 = vadd.f32 %v95_v16, %v94_v14 }
  0x1b   :  { %v85_v19 = vrot.slane %v84_v17, 1  ;;  %v97_v20 = vrot.slane %v96_v18, 1 }
  0x1d   :  { %v86_v23 = vadd.f32 %v85_v19, %v84_v17  ;;  %v98_v24 = vadd.f32 %v97_v20, %v96_v18 }
  0x1f   :  { %v87_v25 = vadd.f32 %v86_v23, %v77_v21  ;;  %v99_v26 = vadd.f32 %v98_v24, %v89_v22 }
  0x21   :  { %88 = vst [vmem:[#allocation7] sm:$0x1] %v87_v25 }
  0x22   :  { %100 = vst [vmem:[#allocation8] sm:$0x1] %v99_v26  ;;  %111 = dma.vmem_to_hbm [thread:$0]  %s107_s1, 16, %s109_s26, [#allocation4]  }
  0x23   :  { %122 = dma.vmem_to_hbm [thread:$0]  %s118_s28, 16, %s120_s4, [#allocation9]  }
  0x24   :  { %246 = dma.done.wait [#allocation4], 16  }
  0x25   :  { %247 = vsyncadd [#allocation4], 4294967280 }
  0x26   :  { %248 = dma.done.wait [#allocation9], 16  }
  0x27   :  { %249 = vsyncadd [#allocation9], 4294967280 }
  0x28   :  { %131 = vsyncpa [#allocation3], 1 }
  0x29   :  { %132 = vsyncpa [#allocation6], 1 }
  0x2a   :  { %133 = vsyncpa [#allocation4], 1 }
  0x2b   :  { %134 = vsyncpa [#allocation9], 1 }

</bundles_post_ra>
